<compile_context>
chip_gen: v7x
topology: tpu7x:2x2x1
jax: 0.10.0
libtpu: 0.0.40
codegen_flags: <defaults>
</compile_context>

<pallas_src>
import jax
import jax.numpy as jnp
from jax.experimental import pallas as pl
from jax.experimental.pallas import tpu as pltpu


_SMALL_N = 4096        # below this, launch/DMA-setup overhead dominates -> plain jnp
_MIN_GRID_STEPS = 4    # keep >= ~4 grid steps so BlockSpec double-buffering overlaps


def _device_kind() -> str:
    try:
        return jax.devices()[0].device_kind.lower()
    except Exception:
        return ""


def _is_v7() -> bool:
    kind = _device_kind()
    return ("v7" in kind) or ("tpu7" in kind)


def _default_block_bytes() -> int:
    kind = _device_kind()
    if _is_v7() or "v6" in kind:
        # 4 MiB blocks: 3 arrays x 2 double-buffers = 24 MiB < 32 MiB default scoped VMEM.
        return 4 << 20
    # v5e (or unknown): 2 MiB blocks -> 12 MiB of the 16 MiB default scoped VMEM.
    return 2 << 20


def _dimension_semantics():
    # "parallel" alone does not shard the grid across v7x's two TensorCores;
    # CORE_PARALLEL does.  Gate by generation so v5e/v6e keep the portable value.
    if _is_v7():
        return (pltpu.CORE_PARALLEL,)
    return ("parallel",)


def _jnp_lerp(start, end, step_s, steps_s):
    # Fused elementwise lerp: 3 HBM passes, hits the HBM roofline on its own.
    alpha = step_s.astype(jnp.float32) / steps_s.astype(jnp.float32)
    return start + (end - start) * alpha


def _linear_sched_kernel(step_ref, steps_ref, start_ref, end_ref, out_ref):
    # Scalar path (SMEM): alpha = step / steps, f32 true division like torch int/int.
    alpha = step_ref[0].astype(jnp.float32) / steps_ref[0].astype(jnp.float32)
    # Vector path: elementwise lerp on the (block_rows, lanes) tile.
    s = start_ref[...]
    out_ref[...] = s + (end_ref[...] - s) * alpha


def linear_scheduler_forward(start, end, step, steps, *,
                             block_rows: int | None = None,
                             small_n: int = _SMALL_N) -> jax.Array:
    """Pallas implementation of LinearScheduler.forward().

    start/end: float vectors of shape (N,); step/steps: int scalars.
    Returns a float32 vector of shape (N,).
    """
    start = jnp.asarray(start, jnp.float32)
    end = jnp.asarray(end, jnp.float32)
    step_s = jnp.asarray(step, jnp.int32)
    steps_s = jnp.asarray(steps, jnp.int32)
    n = start.shape[0]
    assert end.shape == (n,), "start/end must have the same 1-D shape"

    # Lane width: largest multiple of 128 that divides N, so the 2-D slab is a
    # *free* reshape (no pad, no prefix slice -> no extra HBM passes).
    lanes = next((w for w in (512, 256, 128) if n % w == 0), None)

    # Tiny or ragged (N not a multiple of 128) vectors: the fused jnp lerp is
    # already at roofline with zero custom-call / copy overhead.
    if n < small_n or lanes is None:
        return _jnp_lerp(start, end, step_s, steps_s)

    rows = n // lanes
    start2 = start.reshape(rows, lanes)   # free: contiguous reshape
    end2 = end.reshape(rows, lanes)

    # Block sizing: as large as the scoped-VMEM budget allows (generation-aware),
    # but capped so the grid has >= _MIN_GRID_STEPS steps for DMA/compute overlap.
    if block_rows is None:
        max_block_rows = max(8, _default_block_bytes() // (4 * lanes))
        if rows <= 8:
            block_rows = rows                              # full-extent block (exempt)
        else:
            block_rows = min(max_block_rows, pl.cdiv(rows, _MIN_GRID_STEPS))
            block_rows = max(8, (block_rows // 8) * 8)     # (8, 128) tiling rule
    else:
        assert block_rows == rows or (block_rows >= 8 and block_rows % 8 == 0), (
            "block_rows override must be a multiple of 8 or equal the row count")

    grid = (pl.cdiv(rows, block_rows),)
    vec_spec = pl.BlockSpec((block_rows, lanes), lambda i: (i, 0))

    out2 = pl.pallas_call(
        _linear_sched_kernel,
        out_shape=jax.ShapeDtypeStruct((rows, lanes), jnp.float32),
        grid=grid,
        in_specs=[
            pl.BlockSpec(memory_space=pltpu.SMEM),   # step  (scalar, SMEM)
            pl.BlockSpec(memory_space=pltpu.SMEM),   # steps (scalar, SMEM)
            vec_spec,                                # start tile
            vec_spec,                                # end tile
        ],
        out_specs=vec_spec,
        compiler_params=pltpu.CompilerParams(
            dimension_semantics=_dimension_semantics()),
        cost_estimate=pl.CostEstimate(                # cheap streaming op hint
            flops=3 * n, transcendentals=0, bytes_accessed=12 * n),
    )(step_s.reshape(1), steps_s.reshape(1), start2, end2)

    return out2.reshape(-1)                           # free: contiguous reshape


class LinearScheduler:
    """JAX/Pallas port of soulsai.core.scheduler.LinearScheduler."""

    def __init__(self, start, end, steps: int):
        self.start = jnp.asarray(start, jnp.float32)
        self.end = jnp.asarray(end, jnp.float32)
        self.steps = jnp.asarray(steps, jnp.int32)
        self.step = jnp.asarray(0, jnp.int32)

    def forward(self) -> jax.Array:
        return linear_scheduler_forward(self.start, self.end, self.step, self.steps)

    def update(self, n: int = 1):
        # pure scalar bookkeeping — no kernel needed
        self.step = jnp.minimum(self.step + jnp.asarray(n, jnp.int32), self.steps)


if __name__ == "__main__":
    key = jax.random.PRNGKey(0)
    k1, k2, k3, k4 = jax.random.split(key, 4)

    total_steps = 100
    cur_step = 35
    alpha_ref = jnp.float32(cur_step) / jnp.float32(total_steps)

    # 1) module-sized demo (N=4): tiny-N fast path (plain fused jnp)
    n_small = 4
    s_small = jax.random.uniform(k1, (n_small,), jnp.float32, minval=0.5, maxval=1.0)
    e_small = jax.random.uniform(k2, (n_small,), jnp.float32, minval=0.0, maxval=0.1)
    sched = LinearScheduler(s_small, e_small, total_steps)
    for _ in range(7):
        sched.update(5)                       # step -> 35
    out_small = jax.block_until_ready(sched.forward())
    ref_small = s_small + (e_small - s_small) * alpha_ref
    assert out_small.shape == (n_small,) and out_small.dtype == jnp.float32
    assert jnp.allclose(out_small, ref_small, atol=1e-6, rtol=1e-6)

    # 2) Pallas path, auto block sizing: N=16384 -> (32, 512) slab,
    #    block_rows=8 (min-grid-steps cap) -> grid=(4,) pipelined.
    n_big = 16384
    s_big = jax.random.uniform(k3, (n_big,), jnp.float32, minval=0.5, maxval=1.0)
    e_big = jax.random.uniform(k4, (n_big,), jnp.float32, minval=0.0, maxval=0.1)
    out_big = jax.block_until_ready(
        linear_scheduler_forward(s_big, e_big, cur_step, total_steps))
    ref_big = s_big + (e_big - s_big) * alpha_ref
    assert out_big.shape == (n_big,) and out_big.dtype == jnp.float32
    assert jnp.allclose(out_big, ref_big, atol=1e-6, rtol=1e-6)

    # 3) Pallas path, explicit full-extent block override (grid=(1,)):
    #    exercises the single-block code path / block_rows validation.
    out_one = jax.block_until_ready(
        linear_scheduler_forward(s_big, e_big, cur_step, total_steps, block_rows=32))
    assert jnp.allclose(out_one, ref_big, atol=1e-6, rtol=1e-6)

    # 4) ragged N (not a multiple of 128): roofline jnp fallback — no pad/slice
    #    HBM round-trips, bit-identical semantics.
    n_rag = 5000
    s_rag, e_rag = s_big[:n_rag], e_big[:n_rag]
    out_rag = jax.block_until_ready(
        linear_scheduler_forward(s_rag, e_rag, cur_step, total_steps))
    ref_rag = s_rag + (e_rag - s_rag) * alpha_ref
    assert out_rag.shape == (n_rag,) and out_rag.dtype == jnp.float32
    assert jnp.allclose(out_rag, ref_rag, atol=1e-6, rtol=1e-6)

    print("KERNEL_OK")
</pallas_src>

<mosaic_0001>
module attributes {stable_mosaic.version = 11 : i64} {
  func.func @_linear_sched_kernel(%arg0: i32, %arg1: memref<1xi32, #tpu.memory_space<smem>>, %arg2: memref<1xi32, #tpu.memory_space<smem>>, %arg3: memref<8x512xf32, #tpu.memory_space<vmem>>, %arg4: memref<8x512xf32, #tpu.memory_space<vmem>>, %arg5: memref<8x512xf32, #tpu.memory_space<vmem>>) attributes {dimension_semantics = [#tpu.dimension_semantics<parallel>], iteration_bounds = array<i64: 4>, scalar_prefetch = 0 : i64, scratch_operands = 0 : i64, tpu.core_type = #tpu.core_type<tc>, window_params = [{transform_indices = @transform_0, window_bounds = array<i64: 1>}, {transform_indices = @transform_1, window_bounds = array<i64: 1>}, {transform_indices = @transform_2, window_bounds = array<i64: 8, 512>}, {transform_indices = @transform_3, window_bounds = array<i64: 8, 512>}, {transform_indices = @transform_4, window_bounds = array<i64: 8, 512>}]} {
    %c0 = arith.constant 0 : index
    %0 = memref.load %arg1[%c0] : memref<1xi32, #tpu.memory_space<smem>>
    %1 = arith.sitofp %0 : i32 to f32
    %c0_0 = arith.constant 0 : index
    %2 = memref.load %arg2[%c0_0] : memref<1xi32, #tpu.memory_space<smem>>
    %3 = arith.sitofp %2 : i32 to f32
    %4 = arith.divf %1, %3 : f32
    %c0_1 = arith.constant 0 : index
    %c0_2 = arith.constant 0 : index
    %5 = vector.load %arg3[%c0_1, %c0_2] : memref<8x512xf32, #tpu.memory_space<vmem>>, vector<8x512xf32>
    %c0_3 = arith.constant 0 : index
    %c0_4 = arith.constant 0 : index
    %6 = vector.load %arg4[%c0_3, %c0_4] : memref<8x512xf32, #tpu.memory_space<vmem>>, vector<8x512xf32>
    %7 = arith.subf %6, %5 : vector<8x512xf32>
    %8 = vector.broadcast %4 : f32 to vector<8x512xf32>
    %9 = arith.mulf %7, %8 : vector<8x512xf32>
    %10 = arith.addf %5, %9 : vector<8x512xf32>
    %c0_5 = arith.constant 0 : index
    %c0_6 = arith.constant 0 : index
    %11 = vector.load %arg5[%c0_5, %c0_6] : memref<8x512xf32, #tpu.memory_space<vmem>>, vector<8x512xf32>
    tpu.vector_store %arg5[%c0_5, %c0_6], %10 {strides = array<i32>} : memref<8x512xf32, #tpu.memory_space<vmem>>, vector<8x512xf32>,
    return
  }
  func.func @transform_0(%arg0: i32) -> i32 {
    %c0_i32 = arith.constant 0 : i32
    %c0_i32_0 = arith.constant 0 : i32
    return %c0_i32 : i32
  }
  func.func @transform_1(%arg0: i32) -> i32 {
    %c0_i32 = arith.constant 0 : i32
    %c0_i32_0 = arith.constant 0 : i32
    return %c0_i32 : i32
  }
  func.func @transform_2(%arg0: i32) -> (i32, i32) {
    %c0_i32 = arith.constant 0 : i32
    %c0_i32_0 = arith.constant 0 : i32
    return %arg0, %c0_i32 : i32, i32
  }
  func.func @transform_3(%arg0: i32) -> (i32, i32) {
    %c0_i32 = arith.constant 0 : i32
    %c0_i32_0 = arith.constant 0 : i32
    return %arg0, %c0_i32 : i32, i32
  }
  func.func @transform_4(%arg0: i32) -> (i32, i32) {
    %c0_i32 = arith.constant 0 : i32
    %c0_i32_0 = arith.constant 0 : i32
    return %arg0, %c0_i32 : i32, i32
  }
}

</mosaic_0001>

<bundles_post_ra>
// kernel: tpu_custom_call.1
= control target key start
LH: loop header
LB: loop body
LE: loop exit
PB: predicated region body
PF: predicated region fallthrough
CT: control target
= control target key end

     0   :  { %s849_s0 = inlined_call_operand.<no memory space> [shape: s32[1], index: 0, kind: input, shape index: {}]   ;;  %s850_s1 = inlined_call_operand.<no memory space> [shape: s32[1], index: 1, kind: input, shape index: {}]   ;;  %s851_s2 = inlined_call_operand.hbm [shape: f32[32,512], index: 2, kind: input, shape index: {}]   ;;  %s852_s3 = inlined_call_operand.hbm [shape: f32[32,512], index: 3, kind: input, shape index: {}]   ;;  %s853_s4 = inlined_call_operand.hbm [shape: f32[32,512], index: 4, kind: output, shape index: {}]  }
   0x1   :  { %9 = sst [smem:[#allocation2]] %s849_s0 }
   0x2   :  { %10 = sst [smem:[#allocation3]] %s850_s1 }
   0x3   :  { %11 = vsyncpa [#allocation5], 0 }
   0x4   :  { %13 = vsyncpa [#allocation5 + $0x1], 0 }
   0x5   :  { %14 = vsyncpa [#allocation8], 0 }
   0x6   :  { %16 = vsyncpa [#allocation8 + $0x1], 0 }
   0x7   :  { %17 = vsyncpa [#allocation6], 0 }
   0x8   :  { %19 = vsyncpa [#allocation6 + $0x1], 0  ;;  %s637_s19 = smov 0   ;;  %s639_s20 = smov 0  }
   0x9   :  { %s641_s21 = smov 0   ;;  %s643_s22 = smov 0  }
   0xa LB: > { %s658_s0 = sadd.s32 4294967295, %s601_s22   ;;  %s395_s1 = sadd.s32 4294967294, %s601_s22   ;;  %s601_s22 = sphi %s643_s22, %s871_s22   ;;  %s597_s21 = sphi %s641_s21, %s870_s21   ;;  %s593_s20 = sphi %s639_s20, %s869_s20   ;;  %s589_s19 = sphi %s637_s19, %s868_s19  }
   0xb   : > { %s662_s23 = sadd.s32 1, %s601_s22   ;;  %s74_s24 = sadd.s32 1, %s597_s21 }
   0xc   : > { %s71_s25 = ssub.s32 %s601_s22, %s662_s23  ;;  %p81_p0 = scmp.ne.s32.totalorder %s597_s21, %s593_s20 }
   0xd   : > { %p72_p1 = scmp.eq.s32.totalorder %s71_s25, 0  ;;  %p82_p2 = scmp.eq.s32.totalorder %s601_s22, 0 }
   0xe   : > { %p87_p3 = scmp.ne.s32.totalorder %s593_s20, %s589_s19  ;;  %p88_p4 = scmp.eq.s32.totalorder %s658_s0, 0 }
   0xf   : > { %s674_s26 = scalar_select %p72_p1, %s597_s21, %s74_s24  }
  0x10   : > { %p676_p5 = por %p82_p2, %p81_p0  ;;  %p680_p6 = por %p88_p4, %p87_p3 }
  0x11   : > { %p137_p7 = scmp.eq.s32.totalorder %s658_s0, 3  ;;  %p143_p8 = scmp.eq.s32.totalorder %s395_s1, 3 }
  0x12   : > { %s857_s28 = scalar_select %p680_p6, 1, 0 }
  0x13   : > { %p435_p9 = scmp.lt.s32.totalorder %s601_s22, 4  ;;  %p686_p10 = por %p137_p7, %p81_p0 }
  0x14   : > { %p690_p11 = por %p143_p8, %p87_p3  ;;  %s695_s5 = sand.u32 1, %s597_s21  }
  0x15   : > { %s858_s29 = scalar_select %p686_p10, 1, 0 }
  0x16   : > { %s859_s30 = scalar_select %p690_p11, 1, 0 }
  0x17   : > { %s413_s6 = sshll.u32 %s601_s22, 9  ;;  %s398_s7 = sshll.u32 %s695_s5, 5 }
  0x18   : > { %s704_s10 = scalar_lea.hbm %s851_s2, %s413_s6  ;;  %s173_s11 = scalar_lea.vmem [#allocation4], %s398_s7 }
  0x19   : > { %s181_s12 = sshll.u32 %s173_s11, 4  ;;  %p710_p12 = pnand %p435_p9, %p676_p5  ;;  %s714_s12 = int_to_ptr.vmem [resolvable:$true] %s181_s12 }
  0x1a   : > { %s170_s14 = scalar_lea.sflag [#allocation5], %s695_s5  ;;  %s471_s15 = scalar_lea.hbm %s704_s10, 512 }
  0x1b   : > { %p472_p1 = scmp.ne.s32.totalorder %s704_s10, %s471_s15  ;;  %p473_p2 = pneg %p710_p12 }
  0x1c   : > { %s476_s18 = scalar_lea.hbm %s851_s2, 2048  ;;  %p477_p5 = scmp.lt.u32.totalorder %s704_s10, %s851_s2 }
  0x1d   : > { %p474_p3 = pnand %p473_p2, %p472_p1  ;;  %p478_p7 = scmp.lt.u32.totalorder %s476_s18, %s471_s15 }
  0x1e   : > { %p480_p9 = scmp.lt.u32.totalorder %s471_s15, %s704_s10 }
  0x1f   : > { %p475_p4 = pneg %p474_p3  ;;  %p479_p8 = por %p478_p7, %p477_p5 }
  0x21   : > { %p481_p13 = por %p480_p9, %p479_p8 }
  0x23   : > { %p482_p0 = pnand %p481_p13, %p475_p4 }
  0x25   : > { %485 = shalt.err (!%p482_p0)
}
  0x26   : > { %s486_s25 = scalar_lea.vmem %s714_s12, 512  ;;  %s603_s27 = smov [#allocation4]  }
  0x27   : > { %p487_p1 = scmp.ne.s32.totalorder %s714_s12, %s486_s25  ;;  %s491_s8 = sshll.u32 %s603_s27, 4  ;;  %s492_s8 = int_to_ptr.vmem [resolvable:$false] %s491_s8 }
  0x28   : > { %s493_s9 = scalar_lea.vmem %s492_s8, 1024  ;;  %p494_p10 = scmp.lt.s32.totalorder %s714_s12, %s492_s8 }
  0x29   : > { %p489_p3 = pnand %p487_p1, %p473_p2  ;;  %p495_p5 = scmp.lt.s32.totalorder %s493_s9, %s486_s25 }
  0x2b   : > { %p490_p11 = pneg %p489_p3  ;;  %p496_p7 = por %p495_p5, %p494_p10 }
  0x2d   : > { %p497_p8 = pnand %p496_p7, %p490_p11 }
  0x2f   : > { %500 = shalt.err (!%p497_p8)
}
  0x30   : > { %427 = dma.hbm_to_vmem [thread:$0]  (!%p710_p12), %s704_s10, 512, %s714_s12, %s170_s14  }
  0x31   : > { %p861_p13 = scmp.lt.s32.totalorder %s601_s22, 5  ;;  %p862_p0 = scmp.ge.s32.totalorder %s601_s22, 1 }
  0x32   : > { %s757_s17 = scalar_lea.hbm %s852_s3, %s413_s6  ;;  %s192_s18 = scalar_lea.vmem [#allocation7], %s398_s7 }
  0x33   : > { %p748_p4 = pnand %p862_p0, %p861_p13  ;;  %s200_s1 = sshll.u32 %s192_s18, 4  ;;  %s201_s1 = int_to_ptr.vmem [resolvable:$true] %s200_s1 }
  0x34   : > { %s189_s10 = scalar_lea.sflag [#allocation8], %s695_s5  ;;  %s501_s12 = scalar_lea.hbm %s757_s17, 512 }
  0x35   : > { %s863_s11 = scalar_select %p748_p4, 1, 0 }
  0x36   : > { %p502_p10 = scmp.ne.s32.totalorder %s757_s17, %s501_s12  ;;  %s506_s6 = scalar_lea.hbm %s852_s3, 2048 }
  0x37   : > { %p507_p1 = scmp.lt.u32.totalorder %s757_s17, %s852_s3  ;;  %p508_p3 = scmp.lt.u32.totalorder %s506_s6, %s501_s12 }
  0x38   : > { %p504_p11 = pnand %p502_p10, %p473_p2  ;;  %p510_p7 = scmp.lt.u32.totalorder %s501_s12, %s757_s17 }
  0x39   : > { %p509_p5 = por %p508_p3, %p507_p1 }
  0x3a   : > { %p505_p9 = pneg %p504_p11 }
  0x3b   : > { %p511_p8 = por %p510_p7, %p509_p5 }
  0x3d   : > { %p512_p13 = pnand %p511_p8, %p505_p9 }
  0x3f   : > { %515 = shalt.err (!%p512_p13)
}
  0x40   : > { %s516_s5 = scalar_lea.vmem %s201_s1, 512  ;;  %s604_s7 = smov [#allocation7]  }
  0x41   : > { %p517_p0 = scmp.ne.s32.totalorder %s201_s1, %s516_s5  ;;  %s521_s8 = sshll.u32 %s604_s7, 4  ;;  %s522_s8 = int_to_ptr.vmem [resolvable:$false] %s521_s8 }
  0x42   : > { %s523_s9 = scalar_lea.vmem %s522_s8, 1024  ;;  %p524_p6 = scmp.lt.s32.totalorder %s201_s1, %s522_s8 }
  0x43   : > { %p519_p10 = pnand %p517_p0, %p473_p2  ;;  %p525_p4 = scmp.lt.s32.totalorder %s523_s9, %s516_s5 }
  0x45   : > { %p520_p11 = pneg %p519_p10  ;;  %p526_p1 = por %p525_p4, %p524_p6 }
  0x47   : > { %p527_p3 = pnand %p526_p1, %p520_p11 }
  0x49   : > { %530 = shalt.err (!%p527_p3)
}
  0x4a   : > { %430 = dma.hbm_to_vmem [thread:$0]  (!%p710_p12), %s757_s17, 512, %s201_s1, %s189_s10  }
  0x4b   : > { %p864_p9 = scmp.ne.s32.totalorder %s863_s11, 0 }
  0x4c   : > { %s784_s15 = sand.u32 (!%p864_p9), 1, %s593_s20   ;;  %p865_p6 = scmp.ne.s32.totalorder (!%p864_p9), %s857_s28, 0 }
  0x4d   : > { %209 = sbr.rel (%p864_p9) target bundleno = 179 (0xb3), region = 36  ;;  %s787_s16 = sshll.u32 (!%p864_p9), %s784_s15, 5 }
  0x4e   : > { %s212_s18 = scalar_lea.sflag (!%p864_p9), [#allocation5], %s784_s15  ;;  %s215_s12 = scalar_lea.vmem (!%p864_p9), [#allocation4], %s787_s16 }
  0x54   : > { %576 = dma.done.wait (%p865_p6), %s212_s18, 512  }
  0x55   : > { %578 = vsyncadd (%p865_p6), %s212_s18, 4294966784  ;;  %s221_s13 = scalar_lea.sflag [#allocation8], %s784_s15  ;;  %s224_s11 = scalar_lea.vmem [#allocation7], %s787_s16 }
  0x56   : > { %580 = dma.done.wait (%p865_p6), %s221_s13, 512  }
  0x57   : > { %582 = vsyncadd (%p865_p6), %s221_s13, 4294966784  ;;  %s256_s17 = sld [smem:[#allocation3]]  ;;  %v262_v2 = vld [vmem:[%s215_s12] sm:$0xff]  ;;  %v263_v3 = vld [vmem:[%s215_s12 + $0x8] sm:$0xff]  ;;  %s415_s6 = sshll.u32 %s658_s0, 9 }
  0x58   : > { %s254_s10 = sld [smem:[#allocation2]]  ;;  %v264_v4 = vld [vmem:[%s215_s12 + $0x10] sm:$0xff]  ;;  %v265_v5 = vld [vmem:[%s215_s12 + $0x18] sm:$0xff]  ;;  %v266_v6 = vld [vmem:[%s224_s11] sm:$0xff]  ;;  %s253_s25 = scalar_lea.vmem [#allocation9], %s787_s16 }
  0x59   : > { %v267_v7 = vld [vmem:[%s224_s11 + $0x8] sm:$0xff]  ;;  %v268_v8 = vld [vmem:[%s224_s11 + $0x10] sm:$0xff]  ;;  %v269_v9 = vld [vmem:[%s224_s11 + $0x18] sm:$0xff]  ;;  %v270_v10 = vsub.f32 %v266_v6, %v262_v2  ;;  %s302_s27 = sshll.u32 %s253_s25, 4  ;;  %s806_s8 = scalar_lea.hbm %s853_s4, %s415_s6  ;;  %s808_s27 = int_to_ptr.vmem [resolvable:$true] %s302_s27 }
  0x5a   : > { %v271_v11 = vsub.f32 %v267_v7, %v263_v3  ;;  %v272_v12 = vsub.f32 %v268_v8, %v264_v4  ;;  %v273_v13 = vsub.f32 %v269_v9, %v265_v5  ;;  %s288_s0 = scalar_lea.sflag [#allocation6], %s784_s15  ;;  %s531_s9 = scalar_lea.vmem %s808_s27, 512 }
  0x5b   : > { %p532_p12 = scmp.ne.s32.totalorder %s808_s27, %s531_s9  ;;  %p866_p2 = scmp.ne.s32.totalorder %s858_s29, 0 }
  0x5c   : > { %s605_s16 = smov [#allocation9]  }
  0x5d   : > { %s257_s1 = scvt.s32.f32 %s256_s17  ;;  %p533_p4 = pnand %p532_p12, %p866_p2 }
  0x5e   : > { %s255_s14 = scvt.s32.f32 %s254_s10  ;;  %s535_s18 = sshll.u32 %s605_s16, 4  ;;  %s536_s18 = int_to_ptr.vmem [resolvable:$false] %s535_s18 }
  0x5f   : > { %v258_v0 = vstv %s257_s1  ;;  %p534_p5 = pneg %p533_p4  ;;  %s537_s12 = scalar_lea.vmem %s536_s18, 1024 }
  0x60   : > { %469 = vrcp.f32 %v258_v0  ;;  %p538_p7 = scmp.lt.s32.totalorder %s808_s27, %s536_s18  ;;  %p539_p8 = scmp.lt.s32.totalorder %s537_s12, %s531_s9 }
  0x62   : > { %p540_p13 = por %p539_p8, %p538_p7 }
  0x64   : > { %p541_p0 = pnand %p540_p13, %p534_p5 }
  0x6a   : > { %v470_v1 = vpop.eup %469 }
  0x6b   : > { %416 = vpush %v470_v1 }
  0x9c   : > { %s417_s28 = spop %416 }
  0x9d   : > { %s261_s24 = smul.f32 %s417_s28, %s255_s14 }
  0x9f   : > { %v274_v14 = vstv %s261_s24 }
  0xa0   : > { %v275_v15 = vmul.f32 %v274_v14, %v270_v10  ;;  %v276_v16 = vmul.f32 %v274_v14, %v271_v11  ;;  %v277_v17 = vmul.f32 %v274_v14, %v272_v12  ;;  %v278_v18 = vmul.f32 %v274_v14, %v273_v13 }
  0xa2   : > { %v279_v19 = vadd.f32 %v275_v15, %v262_v2  ;;  %v280_v20 = vadd.f32 %v276_v16, %v263_v3  ;;  %v281_v21 = vadd.f32 %v277_v17, %v264_v4  ;;  %v282_v22 = vadd.f32 %v278_v18, %v265_v5 }
  0xa4   : > { %283 = vst [vmem:[%s253_s25] sm:$0xff] %v279_v19  ;;  %284 = vst [vmem:[%s253_s25 + $0x8] sm:$0xff] %v280_v20 }
  0xa5   : > { %285 = vst [vmem:[%s253_s25 + $0x10] sm:$0xff] %v281_v21  ;;  %286 = vst [vmem:[%s253_s25 + $0x18] sm:$0xff] %v282_v22 }
  0xa6   : > { %544 = shalt.err (!%p541_p0)
}
  0xa7   : > { %s545_s15 = scalar_lea.hbm %s806_s8, 512  ;;  %s549_s17 = scalar_lea.hbm %s853_s4, 2048 }
  0xa8   : > { %p546_p10 = scmp.ne.s32.totalorder %s806_s8, %s545_s15  ;;  %p550_p3 = scmp.lt.u32.totalorder %s806_s8, %s853_s4 }
  0xa9   : > { %p551_p9 = scmp.lt.u32.totalorder %s549_s17, %s545_s15  ;;  %p553_p12 = scmp.lt.u32.totalorder %s545_s15, %s806_s8 }
  0xaa   : > { %p547_p11 = pnand %p546_p10, %p866_p2 }
  0xab   : > { %p552_p6 = por %p551_p9, %p550_p3 }
  0xac   : > { %p548_p1 = pneg %p547_p11 }
  0xad   : > { %p554_p4 = por %p553_p12, %p552_p6 }
  0xaf   : > { %p555_p5 = pnand %p554_p4, %p548_p1 }
  0xb1   : > { %558 = shalt.err (!%p555_p5)
}
  0xb2   : > { %422 = dma.vmem_to_hbm [thread:$0]  (%p866_p2), %s808_s27, 512, %s806_s8, %s288_s0  }
  0xb3 PF: > { %p436_p7 = scmp.ge.s32.totalorder %s601_s22, 2  ;;  %s314_s14 = sand.u32 1, %s589_s19  }
  0xb4   : > { %p867_p8 = scmp.ne.s32.totalorder %s859_s30, 0  ;;  %s315_s28 = scalar_lea.sflag [#allocation6], %s314_s14 }
  0xb6   : > { %p432_p13 = pnand %p436_p7, %p867_p8 }
  0xb8   : > { %584 = dma.done.wait (!%p432_p13), %s315_s28, 512  }
  0xb9   : > { %586 = vsyncadd (!%p432_p13), %s315_s28, 4294966784  ;;  %p22_p0 = scmp.ge.s32.totalorder %s662_s23, 6   ;;  %s868_s19 = smov %s593_s20 }
  0xba   : > { %s869_s20 = smov %s597_s21  ;;  %s870_s21 = smov %s674_s26 }
  0xbb   : > { %s871_s22 = smov %s662_s23  ;;  %24 = sbr.rel (!%p22_p0) target bundleno = 10 (0xa), region = 94 }
  0xc2   :  { %320 = vsyncpa [#allocation5], 1 }
  0xc3   :  { %322 = vsyncpa [#allocation5 + $0x1], 1 }
  0xc4   :  { %323 = vsyncpa [#allocation8], 1 }
  0xc5   :  { %325 = vsyncpa [#allocation8 + $0x1], 1 }
  0xc6   :  { %326 = vsyncpa [#allocation6], 1 }
  0xc7   :  { %328 = vsyncpa [#allocation6 + $0x1], 1 }

</bundles_post_ra>
